<compile_context>
chip_gen: v5e
topology: v5e:2x2
jax: 0.10.0
libtpu: 0.0.40
codegen_flags: <defaults>
</compile_context>

<pallas_src>
import functools

import jax
import jax.numpy as jnp
from jax.experimental import pallas as pl
from jax.experimental.pallas import tpu as pltpu


def generator_kernel(x_ref, w_ref, b_ref, o_ref, m_ref, l_ref):
    # x_ref: (tm, D) bf16   w_ref: (D, tn) bf16   b_ref: (1, tn) f32
    # o_ref: (tm, tn)       m_ref/l_ref: (tm, 1) f32 scratch accumulators
    phase = pl.program_id(1)          # 0: accumulate logsumexp, 1: write output
    j = pl.program_id(2)              # vocab block index
    nv = pl.num_programs(2)

    # MXU matmul in bf16 with f32 accumulation; bias add + softmax math in f32.
    logits = jnp.dot(x_ref[...], w_ref[...], preferred_element_type=jnp.float32)
    logits = logits + b_ref[...]

    @pl.when(jnp.logical_and(phase == 0, j == 0))
    def _init():
        m_ref[...] = jnp.full_like(m_ref, -jnp.inf)
        l_ref[...] = jnp.zeros_like(l_ref)

    @pl.when(phase == 0)
    def _accumulate():
        # Online logsumexp update; no output write in phase 0 (the output block
        # is pinned at (i, 0) during phase 0, so nothing is copied to HBM here).
        m_prev = m_ref[...]
        m_new = jnp.maximum(m_prev, jnp.max(logits, axis=-1, keepdims=True))
        l_ref[...] = l_ref[...] * jnp.exp(m_prev - m_new) + jnp.sum(
            jnp.exp(logits - m_new), axis=-1, keepdims=True
        )
        m_ref[...] = m_new

    @pl.when(jnp.logical_and(phase == 0, j == nv - 1))
    def _finalize():
        # Fold into the total logsumexp; m_ref holds the per-row lse for phase 1.
        m_ref[...] = m_ref[...] + jnp.log(l_ref[...])

    @pl.when(phase == 1)
    def _write():
        o_ref[...] = (logits - m_ref[...]).astype(o_ref.dtype)


def prepare_generator_params(w, b, *, tn=1024):
    """One-time weight preparation (do NOT call per forward pass).

    Casts W [D, V] to bf16, pads the vocab axis to a multiple of `tn`, and pads
    the f32 bias with a very negative value so padded columns contribute ~0 to
    the softmax denominator.  Returns (w_bf16_padded, bias_f32_padded, vocab).
    """
    D, V = w.shape
    v_p = pl.cdiv(V, tn) * tn
    w2 = w.astype(jnp.bfloat16)
    b2 = b.astype(jnp.float32)
    if v_p != V:
        w2 = jnp.pad(w2, ((0, 0), (0, v_p - V)))
        b2 = jnp.pad(b2, (0, v_p - V), constant_values=-1e30)
    return w2, b2.reshape(1, v_p), V


@functools.partial(jax.jit, static_argnames=("vocab_size", "tm", "tn", "out_dtype"))
def generator_forward(x, w, b, *, vocab_size, tm=512, tn=1024,
                      out_dtype=jnp.float32):
    """x: [B, S, D] f32; w: [D, V_pad] bf16 (pre-padded); b: [1, V_pad] f32.

    Returns [B, S, vocab_size] log-probs (f32 by default).
    tm: row tile (multiple of 16); tn: vocab tile (multiple of 128) -- must be
    the same tn used in prepare_generator_params.
    """
    B, S, D = x.shape
    d_w, v_p = w.shape
    assert d_w == D, "weight/model_dim mismatch"
    assert tn % 128 == 0 and v_p % tn == 0, \
        "weights must be prepared with the same tn (see prepare_generator_params)"
    assert tm % 16 == 0, "row tile must be a multiple of 16 (bf16 sublane packing)"

    rows = B * S

    # Shrink the row tile when rows is small so the "parallel" row axis yields
    # >= 2 tiles (keeps both TensorCores busy on v7x megacore).
    tm_eff = tm
    while tm_eff > 16 and pl.cdiv(rows, tm_eff) < 2:
        tm_eff //= 2

    rows_p = pl.cdiv(rows, tm_eff) * tm_eff
    x2 = x.reshape(rows, D).astype(jnp.bfloat16)
    if rows_p != rows:
        x2 = jnp.pad(x2, ((0, rows_p - rows), (0, 0)))

    nr = rows_p // tm_eff
    nv = v_p // tn
    out_bytes = jnp.dtype(out_dtype).itemsize

    # Advisory cost: matmul runs in both phases (recompute), exp only in phase 0.
    cost = pl.CostEstimate(
        flops=2 * 2 * rows_p * D * v_p,
        transcendentals=rows_p * v_p,
        bytes_accessed=(2 * nr * D * v_p * 2      # W streamed per row tile, per phase (bf16)
                        + 2 * rows_p * D * 2      # activations, per phase (bf16)
                        + rows_p * v_p * out_bytes),  # single output write
    )

    out = pl.pallas_call(
        generator_kernel,
        out_shape=jax.ShapeDtypeStruct((rows_p, v_p), out_dtype),
        grid_spec=pltpu.PrefetchScalarGridSpec(
            num_scalar_prefetch=0,
            grid=(nr, 2, nv),  # rows (parallel), phase, vocab (innermost)
            in_specs=[
                pl.BlockSpec((tm_eff, D), lambda i, p, j: (i, 0)),   # activations
                pl.BlockSpec((D, tn), lambda i, p, j: (0, j)),       # streamed weight
                pl.BlockSpec((1, tn), lambda i, p, j: (0, j)),       # bias slice
            ],
            # Pinned at (i, 0) throughout phase 0 (no phase-0 copy-outs); only
            # advances -- and is written back -- during phase 1.
            out_specs=pl.BlockSpec((tm_eff, tn), lambda i, p, j: (i, p * j)),
            scratch_shapes=[
                pltpu.VMEM((tm_eff, 1), jnp.float32),  # running max / final lse
                pltpu.VMEM((tm_eff, 1), jnp.float32),  # running sum-exp
            ],
        ),
        compiler_params=pltpu.CompilerParams(
            dimension_semantics=("parallel", "arbitrary", "arbitrary"),
            # Working set is ~10 MiB at tm=512/tn=1024; 48 MiB stays safely under
            # v7x's 64 MiB physical VMEM while allowing larger sweeps on v5e/v6e.
            vmem_limit_bytes=48 * 1024 * 1024,
        ),
        cost_estimate=cost,
    )(x2, w, b)

    # TODO(synk): weight-resident variant (one-time W DMA into VMEM scratch) for
    # v5e/v6e when D*V*2 fits (~96 MiB budget); must stay off on v7x (64 MiB).
    # TODO(synk): matmul-free "re-read logits, subtract lse" second pass for
    # D >> tm (recompute pays ~4*D/tm bytes/elem of W vs 8 bytes/elem re-read).
    return out[:rows, :vocab_size].reshape(B, S, vocab_size)


if __name__ == "__main__":
    # Small shapes consistent with Generator(vocab_size, model_dim).
    # V not a multiple of tn (tests vocab padding); rows not a multiple of the
    # auto-selected tm (tests row padding + multiple row tiles).
    B, S, D, V = 2, 24, 64, 1000

    key = jax.random.PRNGKey(0)
    kx, kw, kb = jax.random.split(key, 3)

    # PyTorch nn.Linear(model_dim, vocab) weight is [V, D]; stored transposed [D, V].
    x = jax.random.normal(kx, (B, S, D), dtype=jnp.float32)
    w = jax.random.normal(kw, (D, V), dtype=jnp.float32) * (1.0 / jnp.sqrt(D))
    b = jax.random.normal(kb, (V,), dtype=jnp.float32) * 0.01

    tn = 256  # small vocab tile for the tiny demo (still a multiple of 128, multi-tile)
    w_prep, b_prep, vocab = prepare_generator_params(w, b, tn=tn)  # one-time prep

    out = generator_forward(x, w_prep, b_prep, vocab_size=vocab, tm=128, tn=tn)
    out = jax.block_until_ready(out)

    # Reference 1: same bf16 matmul inputs, f32 accumulation + f32 softmax.
    logits_ref = jnp.dot(
        x.reshape(-1, D).astype(jnp.bfloat16),
        w.astype(jnp.bfloat16),
        preferred_element_type=jnp.float32,
    ) + b
    ref = jax.nn.log_softmax(logits_ref, axis=-1).reshape(B, S, V)
    assert jnp.allclose(out, ref, atol=1e-3, rtol=1e-3), "mismatch vs bf16 reference"

    # Reference 2: full f32 reference (bf16 weights give ~1e-2-level logit error).
    ref_f32 = jax.nn.log_softmax(x.reshape(-1, D) @ w + b, axis=-1).reshape(B, S, V)
    assert jnp.allclose(out, ref_f32, atol=5e-2, rtol=5e-2), "mismatch vs f32 reference"

    # log-softmax rows must sum (in prob space) to ~1
    assert jnp.allclose(jnp.sum(jnp.exp(out), axis=-1), 1.0, atol=1e-3)

    print("KERNEL_OK")
</pallas_src>

<mosaic_0001>
module attributes {stable_mosaic.version = 11 : i64} {
  func.func @generator_kernel(%arg0: i32, %arg1: i32, %arg2: i32, %arg3: memref<32x64xbf16, #tpu.memory_space<vmem>>, %arg4: memref<64x256xbf16, #tpu.memory_space<vmem>>, %arg5: memref<1x256xf32, #tpu.memory_space<vmem>>, %arg6: memref<32x256xf32, #tpu.memory_space<vmem>>, %arg7: memref<32x1xf32, #tpu.memory_space<vmem>>, %arg8: memref<32x1xf32, #tpu.memory_space<vmem>>) attributes {dimension_semantics = [#tpu.dimension_semantics<parallel>, #tpu.dimension_semantics<arbitrary>, #tpu.dimension_semantics<arbitrary>], iteration_bounds = array<i64: 2, 2, 4>, scalar_prefetch = 0 : i64, scratch_operands = 2 : i64, tpu.core_type = #tpu.core_type<tc>, window_params = [{transform_indices = @transform_0, window_bounds = array<i64: 32, 64>}, {transform_indices = @transform_1, window_bounds = array<i64: 64, 256>}, {transform_indices = @transform_2, window_bounds = array<i64: 1, 256>}, {transform_indices = @transform_3, window_bounds = array<i64: 32, 256>}]} {
    %c0 = arith.constant 0 : index
    %c0_0 = arith.constant 0 : index
    %0 = vector.load %arg3[%c0, %c0_0] : memref<32x64xbf16, #tpu.memory_space<vmem>>, vector<32x64xbf16>
    %c0_1 = arith.constant 0 : index
    %c0_2 = arith.constant 0 : index
    %1 = vector.load %arg4[%c0_1, %c0_2] : memref<64x256xbf16, #tpu.memory_space<vmem>>, vector<64x256xbf16>
    %cst = arith.constant dense<0.000000e+00> : vector<32x256xf32>
    %2 = tpu.matmul %0, %1, %cst {dimension_numbers = #tpu.dot_dimension_numbers<[1], [0], [0], [1], [0, 0, 1, 1], [], []>} : vector<32x64xbf16>, vector<64x256xbf16>, vector<32x256xf32> -> vector<32x256xf32>
    %c0_3 = arith.constant 0 : index
    %c0_4 = arith.constant 0 : index
    %3 = vector.load %arg5[%c0_3, %c0_4] : memref<1x256xf32, #tpu.memory_space<vmem>>, vector<1x256xf32>
    %4 = vector.broadcast %3 : vector<1x256xf32> to vector<32x256xf32>
    %5 = arith.addf %2, %4 : vector<32x256xf32>
    %c0_i32 = arith.constant 0 : i32
    %6 = arith.cmpi eq, %arg1, %c0_i32 : i32
    %c0_i32_5 = arith.constant 0 : i32
    %7 = arith.cmpi eq, %arg2, %c0_i32_5 : i32
    %8 = arith.andi %6, %7 : i1
    %9 = arith.extui %8 : i1 to i32
    %c0_i32_6 = arith.constant 0 : i32
    %10 = arith.cmpi ne, %9, %c0_i32_6 : i32
    scf.if %10 {
      %cst_12 = arith.constant 0xFF800000 : f32
      %22 = vector.broadcast %cst_12 : f32 to vector<32x1xf32>
      %c0_13 = arith.constant 0 : index
      %c0_14 = arith.constant 0 : index
      %23 = vector.load %arg7[%c0_13, %c0_14] : memref<32x1xf32, #tpu.memory_space<vmem>>, vector<32x1xf32>
      tpu.vector_store %arg7[%c0_13, %c0_14], %22 {strides = array<i32>} : memref<32x1xf32, #tpu.memory_space<vmem>>, vector<32x1xf32>,
      %cst_15 = arith.constant 0.000000e+00 : f32
      %24 = vector.broadcast %cst_15 : f32 to vector<32x1xf32>
      %c0_16 = arith.constant 0 : index
      %c0_17 = arith.constant 0 : index
      %25 = vector.load %arg8[%c0_16, %c0_17] : memref<32x1xf32, #tpu.memory_space<vmem>>, vector<32x1xf32>
      tpu.vector_store %arg8[%c0_16, %c0_17], %24 {strides = array<i32>} : memref<32x1xf32, #tpu.memory_space<vmem>>, vector<32x1xf32>,
    } else {
    }
    %c0_i32_7 = arith.constant 0 : i32
    %11 = arith.cmpi eq, %arg1, %c0_i32_7 : i32
    %12 = arith.extui %11 : i1 to i32
    %c0_i32_8 = arith.constant 0 : i32
    %13 = arith.cmpi ne, %12, %c0_i32_8 : i32
    scf.if %13 {
      %c0_12 = arith.constant 0 : index
      %c0_13 = arith.constant 0 : index
      %22 = vector.load %arg7[%c0_12, %c0_13] : memref<32x1xf32, #tpu.memory_space<vmem>>, vector<32x1xf32>
      %cst_14 = arith.constant dense<0xFF800000> : vector<32xf32>
      %23 = vector.multi_reduction <maximumf>, %5, %cst_14 [1] : vector<32x256xf32> to vector<32xf32>
      %24 = vector.shape_cast %23 : vector<32xf32> to vector<32x1xf32>
      %25 = arith.maximumf %22, %24 : vector<32x1xf32>
      %c0_15 = arith.constant 0 : index
      %c0_16 = arith.constant 0 : index
      %26 = vector.load %arg8[%c0_15, %c0_16] : memref<32x1xf32, #tpu.memory_space<vmem>>, vector<32x1xf32>
      %27 = arith.subf %22, %25 : vector<32x1xf32>
      %28 = math.exp %27 : vector<32x1xf32>
      %29 = arith.mulf %26, %28 : vector<32x1xf32>
      %30 = vector.broadcast %25 : vector<32x1xf32> to vector<32x256xf32>
      %31 = arith.subf %5, %30 : vector<32x256xf32>
      %32 = math.exp %31 : vector<32x256xf32>
      %cst_17 = arith.constant dense<0.000000e+00> : vector<32xf32>
      %33 = vector.multi_reduction <add>, %32, %cst_17 [1] : vector<32x256xf32> to vector<32xf32>
      %34 = vector.shape_cast %33 : vector<32xf32> to vector<32x1xf32>
      %35 = arith.addf %29, %34 : vector<32x1xf32>
      %c0_18 = arith.constant 0 : index
      %c0_19 = arith.constant 0 : index
      %36 = vector.load %arg8[%c0_18, %c0_19] : memref<32x1xf32, #tpu.memory_space<vmem>>, vector<32x1xf32>
      tpu.vector_store %arg8[%c0_18, %c0_19], %35 {strides = array<i32>} : memref<32x1xf32, #tpu.memory_space<vmem>>, vector<32x1xf32>,
      %c0_20 = arith.constant 0 : index
      %c0_21 = arith.constant 0 : index
      %37 = vector.load %arg7[%c0_20, %c0_21] : memref<32x1xf32, #tpu.memory_space<vmem>>, vector<32x1xf32>
      tpu.vector_store %arg7[%c0_20, %c0_21], %25 {strides = array<i32>} : memref<32x1xf32, #tpu.memory_space<vmem>>, vector<32x1xf32>,
    } else {
    }
    %c0_i32_9 = arith.constant 0 : i32
    %14 = arith.cmpi eq, %arg1, %c0_i32_9 : i32
    %c3_i32 = arith.constant 3 : i32
    %15 = arith.cmpi eq, %arg2, %c3_i32 : i32
    %16 = arith.andi %14, %15 : i1
    %17 = arith.extui %16 : i1 to i32
    %c0_i32_10 = arith.constant 0 : i32
    %18 = arith.cmpi ne, %17, %c0_i32_10 : i32
    scf.if %18 {
      %c0_12 = arith.constant 0 : index
      %c0_13 = arith.constant 0 : index
      %22 = vector.load %arg7[%c0_12, %c0_13] : memref<32x1xf32, #tpu.memory_space<vmem>>, vector<32x1xf32>
      %c0_14 = arith.constant 0 : index
      %c0_15 = arith.constant 0 : index
      %23 = vector.load %arg8[%c0_14, %c0_15] : memref<32x1xf32, #tpu.memory_space<vmem>>, vector<32x1xf32>
      %24 = math.log %23 : vector<32x1xf32>
      %25 = arith.addf %22, %24 : vector<32x1xf32>
      %c0_16 = arith.constant 0 : index
      %c0_17 = arith.constant 0 : index
      %26 = vector.load %arg7[%c0_16, %c0_17] : memref<32x1xf32, #tpu.memory_space<vmem>>, vector<32x1xf32>
      tpu.vector_store %arg7[%c0_16, %c0_17], %25 {strides = array<i32>} : memref<32x1xf32, #tpu.memory_space<vmem>>, vector<32x1xf32>,
    } else {
    }
    %c1_i32 = arith.constant 1 : i32
    %19 = arith.cmpi eq, %arg1, %c1_i32 : i32
    %20 = arith.extui %19 : i1 to i32
    %c0_i32_11 = arith.constant 0 : i32
    %21 = arith.cmpi ne, %20, %c0_i32_11 : i32
    scf.if %21 {
      %c0_12 = arith.constant 0 : index
      %c0_13 = arith.constant 0 : index
      %22 = vector.load %arg7[%c0_12, %c0_13] : memref<32x1xf32, #tpu.memory_space<vmem>>, vector<32x1xf32>
      %23 = vector.broadcast %22 : vector<32x1xf32> to vector<32x256xf32>
      %24 = arith.subf %5, %23 : vector<32x256xf32>
      %c0_14 = arith.constant 0 : index
      %c0_15 = arith.constant 0 : index
      %25 = vector.load %arg6[%c0_14, %c0_15] : memref<32x256xf32, #tpu.memory_space<vmem>>, vector<32x256xf32>
      tpu.vector_store %arg6[%c0_14, %c0_15], %24 {strides = array<i32>} : memref<32x256xf32, #tpu.memory_space<vmem>>, vector<32x256xf32>,
    } else {
    }
    return
  }
  func.func @transform_0(%arg0: i32, %arg1: i32, %arg2: i32) -> (i32, i32) {
    %c0_i32 = arith.constant 0 : i32
    %c0_i32_0 = arith.constant 0 : i32
    return %arg0, %c0_i32 : i32, i32
  }
  func.func @transform_1(%arg0: i32, %arg1: i32, %arg2: i32) -> (i32, i32) {
    %c0_i32 = arith.constant 0 : i32
    %c0_i32_0 = arith.constant 0 : i32
    return %c0_i32, %arg2 : i32, i32
  }
  func.func @transform_2(%arg0: i32, %arg1: i32, %arg2: i32) -> (i32, i32) {
    %c0_i32 = arith.constant 0 : i32
    %c0_i32_0 = arith.constant 0 : i32
    return %c0_i32, %arg2 : i32, i32
  }
  func.func @transform_3(%arg0: i32, %arg1: i32, %arg2: i32) -> (i32, i32) {
    %0 = arith.muli %arg1, %arg2 : i32
    %c0_i32 = arith.constant 0 : i32
    return %arg0, %0 : i32, i32
  }
}

</mosaic_0001>

<bundles_post_ra>
// kernel: generator_forward.1
= control target key start
LH: loop header
LB: loop body
LE: loop exit
PB: predicated region body
PF: predicated region fallthrough
CT: control target
= control target key end

     0   :  { %8 = vsyncpa [#allocation5], 0  ;;  %s1428_s0 = inlined_call_operand.vmem [shape: bf16[64,64], index: 0, kind: input, shape index: {}]   ;;  %s1429_s1 = inlined_call_operand.hbm [shape: bf16[64,1024], index: 1, kind: input, shape index: {}]   ;;  %s1430_s2 = inlined_call_operand.vmem [shape: f32[1,1024], index: 2, kind: input, shape index: {}]   ;;  %s1431_s3 = inlined_call_operand.vmem [shape: f32[64,1024], index: 3, kind: output, shape index: {}]  }
   0x1   :  { %10 = vsyncpa [#allocation5 + $0x1], 0  ;;  %s1108_s12 = smov 0   ;;  %s1110_s13 = smov 0  }
   0x2   :  { %s1112_s14 = smov 0   ;;  %s1114_s15 = smov 0  }
   0x3   :  { %s1116_s16 = smov 0   ;;  %s1118_s17 = smov 0  }
   0x4   :  { %s1120_s18 = smov 0   ;;  %s1122_s19 = smov 0  }
   0x5   :  { %s1124_s20 = smov 0   ;;  %s1126_s21 = smov 0  }
   0x6   :  { %s1128_s22 = smov 0   ;;  %s1130_s23 = smov 0  }
   0x7 LB: > { %1437 = sst [smem:[#allocation8_spill]] %s1071_s21  ;;  %s718_s24 = sadd.s32 4294967295, %s1079_s23   ;;  %s1079_s23 = sphi %s1130_s23, %s16_s23   ;;  %s1075_s22 = sphi %s1128_s22, %s1451_s22   ;;  %s1071_s21 = sphi %s1126_s21, %s1450_s21   ;;  %s1067_s20 = sphi %s1124_s20, %s1458_s20   ;;  %s1063_s19 = sphi %s1122_s19, %s1448_s19   ;;  %s1059_s18 = sphi %s1120_s18, %s1447_s18   ;;  %s1055_s17 = sphi %s1118_s17, %s1457_s17   ;;  %s1051_s16 = sphi %s1116_s16, %s1456_s16   ;;  %s1047_s15 = sphi %s1114_s15, %s1455_s15   ;;  %s1043_s14 = sphi %s1112_s14, %s1454_s14   ;;  %s1039_s13 = sphi %s1110_s13, %s1453_s13   ;;  %s1035_s12 = sphi %s1108_s12, %s1452_s12  }
   0x8   : > { %1438 = sst [smem:[#allocation9_spill]] %s1075_s22  ;;  %s28_s25 = sadd.s32 1, %s1067_s20 }
   0x9   : > { %p29_p0 = scmp.ge.s32.totalorder %s28_s25, 4  ;;  %s31_s26 = sadd.s32 1, %s1071_s21 }
   0xa   : > { %s35_s27 = sadd.s32 1, %s1075_s22  ;;  %s68_s28 = sadd.s32 1, %s1051_s16 }
   0xb   : > { %s1460_s25 = smov (%p29_p0, %s28_s25), 0  ;;  %s1462_s26 = smov (!%p29_p0, %s31_s26), %s1071_s21 }
   0xc   : > { %1439 = sst [smem:[#allocation10_spill]] %s1460_s25  ;;  %s65_s29 = ssub.s32 %s1067_s20, %s1460_s25 }
   0xd   : > { %p75_p1 = scmp.ne.s32.totalorder %s1051_s16, %s1047_s15  ;;  %p33_p2 = scmp.ge.s32.totalorder %s1462_s26, 2 }
   0xe   : > { %p66_p3 = scmp.eq.s32.totalorder %s65_s29, 0  ;;  %p76_p4 = scmp.eq.s32.totalorder %s1079_s23, 0 }
   0xf   : > { %p81_p5 = scmp.ne.s32.totalorder %s1047_s15, %s1043_s14  ;;  %s1464_s26 = smov (%p33_p2, %s1462_s26), 0 }
  0x10   : > { %1440 = sst [smem:[#allocation11_spill]] %s1464_s26  ;;  %s1466_s27 = smov (!%p33_p2, %s35_s27), %s1075_s22 }
  0x11   : > { %s1187_s30 = scalar_select %p66_p3, %s1051_s16, %s68_s28  }
  0x12   : > { %p37_p6 = scmp.ge.s32.totalorder %s1466_s27, 2  ;;  %p1189_p7 = por %p76_p4, %p75_p1 }
  0x13   : > { %p82_p8 = scmp.eq.s32.totalorder %s718_s24, 0  ;;  %s117_s5 = smul.u32 %s1067_s20, %s1071_s21 }
  0x14   : > { %s1468_s27 = smov (%p37_p6, %s1466_s27), 0  ;;  %s118_s7 = smul.u32 %s1464_s26, %s1460_s25 }
  0x15   : > { %1442 = sst [smem:[#allocation12_spill]] %s1468_s27  ;;  %p1199_p9 = por %p82_p8, %p81_p5 }
  0x16   : > { %s119_s8 = ssub.s32 %s1075_s22, %s1468_s27  ;;  %s124_s9 = sadd.s32 1, %s1039_s13 }
  0x17   : > { %s120_s10 = ssub.s32 %s117_s5, %s118_s7  ;;  %p134_p10 = scmp.ne.s32.totalorder %s1039_s13, %s1035_s12 }
  0x18   : > { %s121_s11 = sor.u32 %s120_s10, %s119_s8  ;;  %p135_p11 = scmp.eq.s32.totalorder %s718_s24, 15 }
  0x19   : > { %p122_p12 = scmp.eq.s32.totalorder %s121_s11, 0  ;;  %p810_p0 = scmp.lt.s32.totalorder %s1079_s23, 16 }
  0x1a   : > { %p1212_p13 = por %p135_p11, %p134_p10  ;;  %s170_s29 = sand.u32 1, %s1051_s16  }
  0x1b   : > { %s1218_s28 = scalar_select %p122_p12, %s1039_s13, %s124_s9  }
  0x1c   : > { %s784_s26 = sshll.u32 %s1067_s20, 3  ;;  %s722_s27 = sshll.u32 %s170_s29, 6 }
  0x1d   : > { %s179_s7 = scalar_lea.hbm %s1429_s1, %s784_s26  ;;  %s174_s10 = scalar_lea.vmem [#allocation4], %s722_s27 }
  0x1e   : > { %s180_s8 = sshll.u32 %s179_s7, 4  ;;  %s182_s22 = sshll.u32 %s174_s10, 4  ;;  %s181_s8 = int_to_ptr.hbm [resolvable:$true] %s180_s8  ;;  %s183_s22 = int_to_ptr.vmem [resolvable:$true] %s182_s22 }
  0x1f   : > { %p807_p1 = pnand %p810_p0, %p1189_p7  ;;  %p725_p2 = scmp.ge.s32.totalorder %s1079_s23, 1 }
  0x20   : > { %s171_s24 = scalar_lea.sflag [#allocation5], %s170_s29  ;;  %s1081_s11 = smov 512  }
  0x21   : > { %s1082_s9 = smov 128   ;;  %s1083_s21 = smov 8  }
  0x22   : > { %809 = dma.hbm_to_vmem [thread:$0]  (!%p807_p1), %s181_s8, 1024, %s183_s22, %s171_s24, %s1081_s11, %s1082_s9, %s1083_s21  }
  0x23   : > { %p198_p3 = scmp.lt.s32.totalorder %s1079_s23, 17 }
  0x25   : > { %p199_p4 = pnand %p725_p2, %p198_p3 }
  0x26   : > { %s204_s25 = sand.u32 (!%p199_p4), 1, %s1047_s15  }
  0x27   : > { %202 = sbr.rel (%p199_p4) target bundleno = 776 (0x308), region = 32  ;;  %s726_s26 = sshll.u32 (!%p199_p4), %s204_s25, 6 }
  0x28   : > { %s205_s5 = scalar_lea.sflag (!%p199_p4), [#allocation5], %s204_s25  ;;  %s1230_s27 = scalar_lea.vmem (!%p199_p4), [#allocation4], %s726_s26 }
  0x2c   : > { %1030 = dma.done.wait (%p1199_p9), %s205_s5, 1024  }
  0x2d   : > { %1032 = vsyncadd (%p1199_p9), %s205_s5, 4294966272  ;;  %s237_s21 = sand.u32 1, %s1035_s12   ;;  %s728_s4 = sshll.u32 %s1063_s19, 2  ;;  %v765_v0 = vld [vmem:[%s1230_s27 + $0x30] sm:$0xf]  ;;  %vm324_vm0 = vcmask 523264  }
  0x2e   : > { %s1237_s22 = sshll.u32 %s237_s21, 6  ;;  %p1240_p5 = scmp.lt.s32.totalorder %s728_s4, 7  ;;  %v794_v1 = vld [vmem:[%s1230_s27 + $0x34] sm:$0xf0]  ;;  %v793_v2 = vld [vmem:[%s1230_s27 + $0x34] sm:$0xf] }
  0x2f   : > { %v766_v3 = vor.u32 %v794_v1, %v765_v0  ;;  %v767_v4 = vld [vmem:[%s1230_s27 + $0x38] sm:$0xf0]  ;;  %v757_v5 = vld [vmem:[%s1230_s27 + $0x20] sm:$0xf]  ;;  %v792_v6 = vld [vmem:[%s1230_s27 + $0x24] sm:$0xf0] }
  0x30   : > { %v770_v7 = vor.u32 %v793_v2, %v767_v4  ;;  %v791_v8 = vld [vmem:[%s1230_s27 + $0x24] sm:$0xf]  ;;  %v759_v9 = vld [vmem:[%s1230_s27 + $0x28] sm:$0xf0]  ;;  %v758_v10 = vor.u32 %v792_v6, %v757_v5  ;;  %v749_v12 = vld [vmem:[%s1230_s27 + $0x10] sm:$0xf] }
  0x31   : > { %335 = vmatpush.bf16.msra.mxu0 %v766_v3  ;;  %796 = vmatpush.bf16.msra.mxu2 %v766_v3  ;;  %v762_v11 = vor.u32 %v791_v8, %v759_v9  ;;  %v790_v13 = vld [vmem:[%s1230_s27 + $0x14] sm:$0xf0]  ;;  %s1470_s4 = smov (!%p1240_p5, %s728_s4), 7  ;;  %v789_v14 = vld [vmem:[%s1230_s27 + $0x14] sm:$0xf]  ;;  %p369_p6 = scmp.eq.s32.totalorder %s1059_s18, 0 }
  0x32   : > { %354 = vmatpush.bf16.msra.mxu1 %v770_v7  ;;  %800 = vmatpush.bf16.msra.mxu3 %v770_v7  ;;  %v751_v15 = vld [vmem:[%s1230_s27 + $0x18] sm:$0xf0]  ;;  %v750_v16 = vor.u32 %v790_v13, %v749_v12  ;;  %v741_v18 = vld [vmem:[%s1230_s27] sm:$0xf]  ;;  %v788_v19 = vld [vmem:[%s1230_s27 + $0x4] sm:$0xf0] }
  0x33   : > { %v754_v17 = vor.u32 %v789_v14, %v751_v15  ;;  %s729_s12 = sshll.u32 %s1470_s4, 2  ;;  %v787_v20 = vld [vmem:[%s1230_s27 + $0x4] sm:$0xf]  ;;  %v743_v21 = vld [vmem:[%s1230_s27 + $0x8] sm:$0xf0]  ;;  %v742_v22 = vor.u32 %v788_v19, %v741_v18  ;;  %p370_p7 = scmp.eq.s32.totalorder %s1055_s17, 0 }
  0x34   : > { %s244_s8 = scalar_lea.vmem %s1428_s0, %s729_s12  ;;  %v746_v23 = vor.u32 %v787_v20, %v743_v21  ;;  %s730_s24 = sshll.u32 %s1055_s17, 1 }
  0x35   : > { %336 = vmatpush.bf16.msra.mxu0 %v758_v10  ;;  %797 = vmatpush.bf16.msra.mxu2 %v758_v10  ;;  %v785_v24 = vld [vmem:[%s244_s8] sm:$0xff]  ;;  %v786_v25 = vld [vmem:[%s244_s8 + $0x8] sm:$0xff]  ;;  %p1269_p8 = pnand %p370_p7, %p369_p6  ;;  %p248_p9 = scmp.lt.s32.totalorder %s730_s24, 7 }
  0x36   : > { %355 = vmatpush.bf16.msra.mxu1 %v762_v11  ;;  %801 = vmatpush.bf16.msra.mxu3 %v762_v11  ;;  %s1294_s26 = scalar_lea.vmem [#allocation6], %s1237_s22 }
  0x37   : > { %s1472_s24 = smov (!%p248_p9, %s730_s24), 7 }
  0x38   : > { %s250_s25 = scalar_lea.vmem %s1430_s2, %s1472_s24 }
  0x39   : > { %337 = vmatpush.bf16.msra.mxu0 %v750_v16  ;;  %798 = vmatpush.bf16.msra.mxu2 %v750_v16  ;;  %v268_v26 = vld [vmem:[%s250_s25] sm:$0x3] }
  0x3a   : > { %356 = vmatpush.bf16.msra.mxu1 %v754_v17  ;;  %802 = vmatpush.bf16.msra.mxu3 %v754_v17  ;;  %v270_v27 = vperm.slane %v268_v26, 0  ;;  %v271_v28 = vperm.slane %v268_v26, 1 }
  0x3d   : > { %338 = vmatpush.bf16.msra.mxu0 %v742_v22  ;;  %799 = vmatpush.bf16.msra.mxu2 %v742_v22 }
  0x3e   : > { %357 = vmatpush.bf16.msra.mxu1 %v746_v23  ;;  %803 = vmatpush.bf16.msra.mxu3 %v746_v23 }
  0x40   : > { %771 = vmatmul.msk.bf16.vlgmr.msra.gmra.mxu0 %vm324_vm0, %v785_v24  ;;  %772 = vmatmul.msk.bf16.vlgmr.msra.gmra.mxu2 %vm324_vm0, %v786_v25 }
  0x41   : > { %773 = vmatmul.msk.bf16.vlgmr.msra.gmra.mxu1 %vm324_vm0, %v785_v24  ;;  %774 = vmatmul.msk.bf16.vlgmr.msra.gmra.mxu3 %vm324_vm0, %v786_v25 }
  0xbd   : > { %v340_v29 = vpop.f32.mrf.mxu0 }
  0xbe   : > { %v1277_v30 = vadd.f32 %v340_v29, %v270_v27  ;;  %v359_v31 = vpop.f32.mrf.mxu1 }
  0xbf   : > { %v1279_v32 = vadd.f32 %v359_v31, %v271_v28 }
  0xc3   : > { %v345_v33 = vpop.f32.mrf.mxu2 }
  0xc4   : > { %v1281_v34 = vadd.f32 %v345_v33, %v270_v27  ;;  %v364_v35 = vpop.f32.mrf.mxu3 }
  0xc5   : > { %v1283_v36 = vadd.f32 %v364_v35, %v271_v28  ;;  %v342_v37 = vpop.f32.mrf.mxu0 }
  0xc6   : > { %v1285_v38 = vadd.f32 %v342_v37, %v270_v27  ;;  %v361_v39 = vpop.f32.mrf.mxu1 }
  0xc7   : > { %v1287_v40 = vadd.f32 %v361_v39, %v271_v28 }
  0xc9   : > { %374 = sbr.rel (%p1269_p8) target bundleno = 215 (0xd7), region = 40 }
  0xcb   : > { %v347_v41 = vpop.f32.mrf.mxu2 }
  0xcc   : > { %v1289_v42 = vadd.f32 %v347_v41, %v270_v27  ;;  %v366_v43 = vpop.f32.mrf.mxu3 }
  0xcd   : > { %v1291_v44 = vadd.f32 %v366_v43, %v271_v28 }
  0xce   : > { %vm375_vm1 = vcmask 7168   ;;  %v1084_v45 = vmov -inf   ;;  %v1085_v46 = vmov 0.0  }
  0xcf   : > { %376 = vst.msk [vmem:[#allocation2] sm:$0xff] %vm375_vm1, %v1084_v45 }
  0xd0   : > { %377 = vst.msk [vmem:[#allocation2 + $0x8] sm:$0xff] %vm375_vm1, %v1084_v45 }
  0xd1   : > { %378 = vst.msk [vmem:[#allocation2 + $0x10] sm:$0xff] %vm375_vm1, %v1084_v45 }
  0xd2   : > { %379 = vst.msk [vmem:[#allocation2 + $0x18] sm:$0xff] %vm375_vm1, %v1084_v45 }
  0xd3   : > { %380 = vst.msk [vmem:[#allocation3] sm:$0xff] %vm375_vm1, %v1085_v46 }
  0xd4   : > { %381 = vst.msk [vmem:[#allocation3 + $0x8] sm:$0xff] %vm375_vm1, %v1085_v46 }
  0xd5   : > { %382 = vst.msk [vmem:[#allocation3 + $0x10] sm:$0xff] %vm375_vm1, %v1085_v46 }
  0xd6   : > { %383 = vst.msk [vmem:[#allocation3 + $0x18] sm:$0xff] %vm375_vm1, %v1085_v46 }
  0xd7 PF: > { %p775_p10 = scmp.ne.s32.totalorder %s1059_s18, 0 }
  0xd9   : > { %386 = sbr.rel (%p775_p10) target bundleno = 598 (0x256), region = 44 }
  0xde   : > { %v397_v47 = vmax.f32 %v1281_v34, %v1283_v36  ;;  %v391_v48 = vmax.f32 %v1277_v30, %v1279_v32  ;;  %v400_v49 = vmax.f32 %v1289_v42, %v1291_v44  ;;  %v394_v50 = vmax.f32 %v1285_v38, %v1287_v40  ;;  %v1307_v52 = vld [vmem:[#allocation2 + $0x10] sm:$0xff]  ;;  %v1309_v53 = vld [vmem:[#allocation2] sm:$0xff]  ;;  %v1327_v60 = vld [vmem:[#allocation2 + $0x18] sm:$0xff] }
  0xdf   : > { %v1086_v51 = vmov 0   ;;  %vm487_vm2 = vcmask 7168   ;;  %v388_v61 = vld [vmem:[#allocation2 + $0x8] sm:$0xff] }
  0xe0   : > { %398 = vmax.xlane.f32.xlu1 %v397_v47  ;;  %392 = vmax.xlane.f32.xlu0 %v391_v48  ;;  %v407_v47 = vld [vmem:[#allocation3] sm:$0xff] }
  0xe1   : > { %915 = vset.pattern.permute.xlu0 %v1086_v51  ;;  %914 = vset.pattern.permute.xlu2 %v1086_v51 }
  0xe2   : > { %916 = vset.pattern.permute.xlu1 %v1086_v51 }
  0xe8   : > { %401 = vmax.xlane.f32.xlu1 %v400_v49  ;;  %395 = vmax.xlane.f32.xlu0 %v394_v50 }
 0x153   : > { %v399_v54 = vpop.xlane.xlu1 %398  ;;  %v393_v55 = vpop.xlane.xlu0 %392 }
 0x154   : > { %v1312_v56 = vmax.f32 %v1307_v52, %v399_v54  ;;  %v1315_v57 = vmax.f32 %v1309_v53, %v393_v55 }
 0x156   : > { %v413_v58 = vsub.f32 %v1307_v52, %v1312_v56  ;;  %494 = vst.msk [vmem:[#allocation2 + $0x10] sm:$0xff] %vm487_vm2, %v1312_v56  ;;  %v411_v59 = vsub.f32 %v1309_v53, %v1315_v57  ;;  %439 = vperm.xlu0 %915, %v1312_v56   ;;  %429 = vperm.xlu2 %914, %v1315_v57   ;;  %v408_v53 = vld [vmem:[#allocation3 + $0x8] sm:$0xff] }
 0x157   : > { %492 = vst.msk [vmem:[#allocation2] sm:$0xff] %vm487_vm2, %v1315_v57 }
 0x158   : > { %v415_v43 = vmul.f32 1.442695, %v411_v59 }
 0x15b   : > { %v402_v62 = vpop.xlane.xlu1 %401  ;;  %v396_v63 = vpop.xlane.xlu0 %395 }
 0x15c   : > { %v1330_v0 = vmax.f32 %v1327_v60, %v402_v62  ;;  %v404_v1 = vmax.f32 %v388_v61, %v396_v63  ;;  %v409_v63 = vld [vmem:[#allocation3 + $0x10] sm:$0xff] }
 0x15e   : > { %v414_v2 = vsub.f32 %v1327_v60, %v1330_v0  ;;  %495 = vst.msk [vmem:[#allocation2 + $0x18] sm:$0xff] %vm487_vm2, %v1330_v0  ;;  %v412_v3 = vsub.f32 %v388_v61, %v404_v1  ;;  %444 = vperm.xlu1 %916, %v1330_v0   ;;  %434 = vperm.xlu2 %914, %v404_v1   ;;  %v419_v61 = vmul.f32 1.442695, %v413_v58 }
 0x15f   : > { %493 = vst.msk [vmem:[#allocation2 + $0x8] sm:$0xff] %vm487_vm2, %v404_v1 }
 0x160   : > { %v417_v45 = vmul.f32 1.442695, %v412_v3  ;;  %v421_v59 = vmul.f32 1.442695, %v414_v2 }
 0x1b0   : > { %v430_v4 = vpop.permute.xlu2 %429 }
 0x1b1   : > { %v447_v5 = vsub.f32 %v1277_v30, %v430_v4  ;;  %v448_v6 = vsub.f32 %v1279_v32, %v430_v4 }
 0x1b3   : > { %v455_v7 = vmul.f32 1.442695, %v447_v5  ;;  %v457_v8 = vmul.f32 1.442695, %v448_v6  ;;  %v410_v6 = vld [vmem:[#allocation3 + $0x18] sm:$0xff] }
 0x1b5   : > { %917 = vpow2.f32 %v455_v7 }
 0x1b6   : > { %919 = vpow2.f32 %v457_v8 }
 0x1b8   : > { %v435_v9 = vpop.permute.xlu2 %434 }
 0x1b9   : > { %v449_v10 = vsub.f32 %v1285_v38, %v435_v9  ;;  %v450_v11 = vsub.f32 %v1287_v40, %v435_v9 }
 0x1bb   : > { %v918_v12 = vpop.eup %917  ;;  %v459_v13 = vmul.f32 1.442695, %v449_v10  ;;  %v461_v14 = vmul.f32 1.442695, %v450_v11 }
 0x1bc   : > { %v920_v15 = vpop.eup %919 }
 0x1bd   : > { %921 = vpow2.f32 %v459_v13  ;;  %v471_v16 = vadd.f32 %v920_v15, %v918_v12 }
 0x1be   : > { %923 = vpow2.f32 %v461_v14 }
 0x1bf   : > { %472 = vadd.xlane.f32.xlu2 %v471_v16 }
 0x1c3   : > { %v922_v17 = vpop.eup %921 }
 0x1c4   : > { %v924_v18 = vpop.eup %923 }
 0x1c5   : > { %v474_v19 = vadd.f32 %v924_v18, %v922_v17 }
 0x1c7   : > { %475 = vadd.xlane.f32.xlu1 %v474_v19 }
 0x1c8   : > { %v440_v20 = vpop.permute.xlu0 %439 }
 0x1c9   : > { %v451_v21 = vsub.f32 %v1281_v34, %v440_v20  ;;  %v452_v22 = vsub.f32 %v1283_v36, %v440_v20 }
 0x1cb   : > { %v463_v23 = vmul.f32 1.442695, %v451_v21  ;;  %v465_v24 = vmul.f32 1.442695, %v452_v22 }
 0x1cd   : > { %925 = vpow2.f32 %v463_v23 }
 0x1ce   : > { %927 = vpow2.f32 %v465_v24 }
 0x1d0   : > { %v445_v25 = vpop.permute.xlu1 %444 }
 0x1d1   : > { %v453_v26 = vsub.f32 %v1289_v42, %v445_v25  ;;  %v454_v27 = vsub.f32 %v1291_v44, %v445_v25 }
 0x1d3   : > { %v926_v28 = vpop.eup %925  ;;  %v467_v29 = vmul.f32 1.442695, %v453_v26  ;;  %v469_v31 = vmul.f32 1.442695, %v454_v27 }
 0x1d4   : > { %v928_v33 = vpop.eup %927 }
 0x1d5   : > { %929 = vpow2.f32 %v467_v29  ;;  %v477_v35 = vadd.f32 %v928_v33, %v926_v28 }
 0x1d6   : > { %931 = vpow2.f32 %v469_v31 }
 0x1d7   : > { %478 = vadd.xlane.f32.xlu0 %v477_v35  ;;  %933 = vpow2.f32 %v415_v43 }
 0x1d8   : > { %935 = vpow2.f32 %v417_v45 }
 0x1d9   : > { %937 = vpow2.f32 %v419_v61 }
 0x1da   : > { %939 = vpow2.f32 %v421_v59 }
 0x1db   : > { %v930_v37 = vpop.eup %929 }
 0x1dc   : > { %v932_v39 = vpop.eup %931 }
 0x1dd   : > { %v480_v41 = vadd.f32 %v932_v39, %v930_v37  ;;  %v934_v46 = vpop.eup %933 }
 0x1de   : > { %v423_v48 = vmul.f32 %v934_v46, %v407_v47  ;;  %v936_v51 = vpop.eup %935 }
 0x1df   : > { %481 = vadd.xlane.f32.xlu2 %v480_v41  ;;  %v424_v54 = vmul.f32 %v936_v51, %v408_v53  ;;  %v938_v62 = vpop.eup %937 }
 0x1e0   : > { %v425_v1 = vmul.f32 %v938_v62, %v409_v63  ;;  %v940_v5 = vpop.eup %939 }
 0x1e1   : > { %v426_v7 = vmul.f32 %v940_v5, %v410_v6 }
 0x232   : > { %v473_v49 = vpop.xlane.xlu2 %472 }
 0x233   : > { %v483_v50 = vadd.f32 %v473_v49, %v423_v48 }
 0x235   : > { %488 = vst.msk [vmem:[#allocation3] sm:$0xff] %vm487_vm2, %v483_v50 }
 0x23a   : > { %v476_v55 = vpop.xlane.xlu1 %475 }
 0x23b   : > { %v484_v57 = vadd.f32 %v476_v55, %v424_v54 }
 0x23d   : > { %489 = vst.msk [vmem:[#allocation3 + $0x8] sm:$0xff] %vm487_vm2, %v484_v57 }
 0x24a   : > { %v479_v3 = vpop.xlane.xlu0 %478 }
 0x24b   : > { %v485_v4 = vadd.f32 %v479_v3, %v425_v1 }
 0x24d   : > { %490 = vst.msk [vmem:[#allocation3 + $0x10] sm:$0xff] %vm487_vm2, %v485_v4 }
 0x252   : > { %v482_v52 = vpop.xlane.xlu2 %481 }
 0x253   : > { %v486_v56 = vadd.f32 %v482_v52, %v426_v7 }
 0x255   : > { %491 = vst.msk [vmem:[#allocation3 + $0x18] sm:$0xff] %vm487_vm2, %v486_v56 }
 0x256 PF: > { %p496_p11 = scmp.eq.s32.totalorder %s1055_s17, 3 }
 0x258   : > { %p497_p12 = pnand %p496_p11, %p369_p6 }
 0x25a   : > { %500 = sbr.rel (%p497_p12) target bundleno = 623 (0x26f), region = 48 }
 0x25f   : > { %v505_v58 = vld [vmem:[#allocation3] sm:$0xff]  ;;  %v506_v60 = vld [vmem:[#allocation3 + $0x8] sm:$0xff]  ;;  %v507_v0 = vld [vmem:[#allocation3 + $0x10] sm:$0xff]  ;;  %vm521_vm3 = vcmask 7168  }
 0x260   : > { %941 = vlog2.f32 %v505_v58  ;;  %v508_v2 = vld [vmem:[#allocation3 + $0x18] sm:$0xff]  ;;  %v501_v9 = vld [vmem:[#allocation2] sm:$0xff]  ;;  %v502_v12 = vld [vmem:[#allocation2 + $0x8] sm:$0xff] }
 0x261   : > { %943 = vlog2.f32 %v506_v60  ;;  %v503_v15 = vld [vmem:[#allocation2 + $0x10] sm:$0xff]  ;;  %v504_v19 = vld [vmem:[#allocation2 + $0x18] sm:$0xff] }
 0x262   : > { %945 = vlog2.f32 %v507_v0 }
 0x263   : > { %947 = vlog2.f32 %v508_v2 }
 0x266   : > { %v942_v8 = vpop.eup %941 }
 0x267   : > { %v944_v10 = vpop.eup %943  ;;  %v510_v11 = vmul.f32 0.6931472, %v942_v8 }
 0x268   : > { %v946_v13 = vpop.eup %945  ;;  %v512_v14 = vmul.f32 0.6931472, %v944_v10 }
 0x269   : > { %v948_v16 = vpop.eup %947  ;;  %v517_v17 = vadd.f32 %v510_v11, %v501_v9  ;;  %v514_v18 = vmul.f32 0.6931472, %v946_v13 }
 0x26a   : > { %v518_v20 = vadd.f32 %v512_v14, %v502_v12  ;;  %v516_v21 = vmul.f32 0.6931472, %v948_v16 }
 0x26b   : > { %522 = vst.msk [vmem:[#allocation2] sm:$0xff] %vm521_vm3, %v517_v17  ;;  %v519_v22 = vadd.f32 %v514_v18, %v503_v15 }
 0x26c   : > { %523 = vst.msk [vmem:[#allocation2 + $0x8] sm:$0xff] %vm521_vm3, %v518_v20  ;;  %v520_v23 = vadd.f32 %v516_v21, %v504_v19 }
 0x26d   : > { %524 = vst.msk [vmem:[#allocation2 + $0x10] sm:$0xff] %vm521_vm3, %v519_v22 }
 0x26e   : > { %525 = vst.msk [vmem:[#allocation2 + $0x18] sm:$0xff] %vm521_vm3, %v520_v23 }
 0x26f PF: > { %p776_p0 = scmp.ne.s32.totalorder %s1059_s18, 1 }
 0x271   : > { %529 = sbr.rel (%p776_p0) target bundleno = 761 (0x2f9), region = 52 }
 0x276   : > { %v532_v24 = vld [vmem:[#allocation2 + $0x10] sm:$0xff]  ;;  %v530_v25 = vld [vmem:[#allocation2] sm:$0xff]  ;;  %v1087_v26 = vmov 0   ;;  %v533_v27 = vld [vmem:[#allocation2 + $0x18] sm:$0xff] }
 0x277   : > { %950 = vset.pattern.permute.xlu1 %v1087_v26  ;;  %949 = vset.pattern.permute.xlu0 %v1087_v26  ;;  %v531_v28 = vld [vmem:[#allocation2 + $0x8] sm:$0xff] }
 0x278   : > { %546 = vperm.xlu1 %950, %v532_v24   ;;  %536 = vperm.xlu0 %949, %v530_v25  }
 0x280   : > { %551 = vperm.xlu1 %950, %v533_v27   ;;  %541 = vperm.xlu0 %949, %v531_v28  }
 0x2ea   : > { %v547_v29 = vpop.permute.xlu1 %546  ;;  %v537_v31 = vpop.permute.xlu0 %536 }
 0x2eb   : > { %v558_v33 = vsub.f32 %v1281_v34, %v547_v29  ;;  %v559_v35 = vsub.f32 %v1283_v36, %v547_v29  ;;  %v554_v37 = vsub.f32 %v1277_v30, %v537_v31  ;;  %v555_v39 = vsub.f32 %v1279_v32, %v537_v31 }
 0x2ed   : > { %566 = vst [vmem:[%s1294_s26 + $0x20] sm:$0xff] %v558_v33 }
 0x2ee   : > { %567 = vst [vmem:[%s1294_s26 + $0x28] sm:$0xff] %v559_v35 }
 0x2ef   : > { %562 = vst [vmem:[%s1294_s26] sm:$0xff] %v554_v37 }
 0x2f0   : > { %563 = vst [vmem:[%s1294_s26 + $0x8] sm:$0xff] %v555_v39 }
 0x2f2   : > { %v552_v41 = vpop.permute.xlu1 %551  ;;  %v542_v43 = vpop.permute.xlu0 %541 }
 0x2f3   : > { %v560_v45 = vsub.f32 %v1289_v42, %v552_v41  ;;  %v561_v46 = vsub.f32 %v1291_v44, %v552_v41  ;;  %v556_v34 = vsub.f32 %v1285_v38, %v542_v43  ;;  %v557_v47 = vsub.f32 %v1287_v40, %v542_v43 }
 0x2f5   : > { %568 = vst [vmem:[%s1294_s26 + $0x30] sm:$0xff] %v560_v45 }
 0x2f6   : > { %569 = vst [vmem:[%s1294_s26 + $0x38] sm:$0xff] %v561_v46 }
 0x2f7   : > { %564 = vst [vmem:[%s1294_s26 + $0x10] sm:$0xff] %v556_v34 }
 0x2f8   : > { %565 = vst [vmem:[%s1294_s26 + $0x18] sm:$0xff] %v557_v47 }
 0x2f9 PF: > { %576 = sbr.rel (!%p1212_p13) target bundleno = 776 (0x308), region = 56  ;;  %s795_s27 = sshll.u32 (%p1212_p13), %s1063_s19, 5  ;;  %v596_v30 = vld [vmem:[%s1294_s26] sm:$0xff] (%p1212_p13)  ;;  %v598_v32 = vld [vmem:[%s1294_s26 + $0x8] sm:$0xff] (%p1212_p13) }
 0x2fa   : > { %s577_s5 = smul.u32 (%p1212_p13), %s1055_s17, %s1059_s18  ;;  %v604_v40 = vld [vmem:[%s1294_s26 + $0x20] sm:$0xff] (%p1212_p13)  ;;  %v606_v42 = vld [vmem:[%s1294_s26 + $0x28] sm:$0xff] (%p1212_p13) }
 0x2fc   : > { %s779_s21 = sshll.u32 (%p1212_p13), %s577_s5, 1  ;;  %v608_v44 = vld [vmem:[%s1294_s26 + $0x30] sm:$0xff] (%p1212_p13) }
 0x2fd   : > { %s581_s22 = sadd.s32 (%p1212_p13), %s795_s27, %s779_s21  ;;  %v610_v48 = vld [vmem:[%s1294_s26 + $0x38] sm:$0xff] (%p1212_p13) }
 0x2fe   : > { %s781_s4 = sshll.u32 %s581_s22, 3  ;;  %v600_v36 = vld [vmem:[%s1294_s26 + $0x10] sm:$0xff] }
 0x2ff   : > { %s583_s12 = scalar_lea.vmem %s1431_s3, %s781_s4  ;;  %v602_v38 = vld [vmem:[%s1294_s26 + $0x18] sm:$0xff] }
 0x300   : > { %597 = vst [vmem:[%s583_s12] sm:$0xff] %v596_v30 }
 0x301   : > { %599 = vst [vmem:[%s583_s12 + $0x8] sm:$0xff] %v598_v32 }
 0x302   : > { %601 = vst [vmem:[%s583_s12 + $0x40] sm:$0xff] %v600_v36 }
 0x303   : > { %603 = vst [vmem:[%s583_s12 + $0x48] sm:$0xff] %v602_v38 }
 0x304   : > { %605 = vst [vmem:[%s583_s12 + $0x80] sm:$0xff] %v604_v40 }
 0x305   : > { %607 = vst [vmem:[%s583_s12 + $0x88] sm:$0xff] %v606_v42 }
 0x306   : > { %609 = vst [vmem:[%s583_s12 + $0xc0] sm:$0xff] %v608_v44 }
 0x307   : > { %611 = vst [vmem:[%s583_s12 + $0xc8] sm:$0xff] %v610_v48 }
 0x308 PF: > { %s16_s23 = sadd.s32 1, %s1079_s23   ;;  %s1447_s18 = sld [smem:[#allocation8_spill]] }
 0x309   : > { %p13_p13 = scmp.ge.s32.totalorder %s16_s23, 18   ;;  %s1448_s19 = sld [smem:[#allocation9_spill]] }
 0x30a   : > { %s1449_s6 = sld [smem:[#allocation10_spill]]  ;;  %s1452_s12 = smov %s1039_s13 }
 0x30b   : > { %s1450_s21 = sld [smem:[#allocation11_spill]]  ;;  %s1453_s13 = smov %s1218_s28 }
 0x30c   : > { %s1451_s22 = sld [smem:[#allocation12_spill]]  ;;  %s1454_s14 = smov %s1047_s15 }
 0x30d   : > { %s1455_s15 = smov %s1051_s16  ;;  %s1456_s16 = smov %s1187_s30 }
 0x30e   : > { %s1457_s17 = smov %s1067_s20  ;;  %15 = sbr.rel (!%p13_p13) target bundleno = 7 (0x7), region = 117 }
 0x310   : > { %s1458_s20 = smov %s1449_s6 }
 0x313   :  { %627 = vsyncpa [#allocation5], 1 }
 0x314   :  { %629 = vsyncpa [#allocation5 + $0x1], 1 }

</bundles_post_ra>
